<compile_context>
chip_gen: v7x
topology: tpu7x:2x2x1
jax: 0.10.0
libtpu: 0.0.40
codegen_flags: <defaults>
</compile_context>

<pallas_src>
import numpy as np
import jax
import jax.numpy as jnp
from jax.experimental import pallas as pl
from jax.experimental.pallas import tpu as pltpu

TILE_PROJ = 512         # max row tile for the qkv/norm1 projection kernel
TILE_ATTN = 256         # max row tile for the fused attention+MLP+prune kernel
A_PAD = 32              # 27 attendee slots padded to 32 (multiple of 16 sublanes)
P_PAD = 128             # pruning logits padded 20 -> 128 for lane-dense stores
LN_EPS = 1e-5           # nn.LayerNorm default eps
NEG_BIG = 1e30          # additive mask magnitude (underflows exp in f32)


# ----------------------------------------------------------------------------
# Pallas kernels
# ----------------------------------------------------------------------------
def _qkv_ln_kernel(x_ref, w_ref, b_ref, g1_ref, be1_ref, q_ref, k_ref, v_ref):
    """One fused bf16 (T,C)@(C,3C) matmul (f32 accum) -> q (no bias), k, v;
    norm1 applied ONCE per point to k/v (row-wise LN commutes with the window
    gather); q is emitted pre-scaled by feat_dim**-0.5; all outputs in bf16."""
    C = q_ref.shape[-1]
    scale = float(C) ** (-0.5)                      # reference scales scores by feat_dim**-0.5
    x = x_ref[...].astype(jnp.bfloat16)
    y = jnp.dot(x, w_ref[...], preferred_element_type=jnp.float32) + b_ref[...]
    q = y[:, :C]
    k = y[:, C:2 * C]
    v = y[:, 2 * C:3 * C]

    g1 = g1_ref[...]
    be1 = be1_ref[...]

    def layernorm(z):
        mu = jnp.mean(z, axis=-1, keepdims=True)
        zc = z - mu
        var = jnp.mean(zc * zc, axis=-1, keepdims=True)
        return zc * jax.lax.rsqrt(var + LN_EPS) * g1 + be1

    q_ref[...] = (q * scale).astype(jnp.bfloat16)   # fold the score scale into q once
    k_ref[...] = layernorm(k).astype(jnp.bfloat16)
    v_ref[...] = layernorm(v).astype(jnp.bfloat16)


def _erf_approx(x):
    # Abramowitz-Stegun 7.1.26, |abs err| < 1.5e-7 (matches exact-erf nn.GELU()).
    # TODO(synk): switch to jax.lax.erf if/when Mosaic guarantees an erf lowering.
    ax = jnp.abs(x)
    t = 1.0 / (1.0 + 0.3275911 * ax)
    poly = ((((1.061405429 * t - 1.453152027) * t + 1.421413741) * t
             - 0.284496736) * t + 0.254829592) * t
    y = 1.0 - poly * jnp.exp(-ax * ax)
    return jnp.where(x >= 0, y, -y)


def _attn_mlp_prune_kernel(q_ref, kw_ref, vw_ref, bias_ref, r_ref,
                           bd_ref, g2_ref, be2_ref, w1_ref, b1_ref,
                           w2_ref, b2_ref, wp_ref, bp_ref,
                           o_ref, p_ref):
    """Fused: masked multi-head expanding attention (all heads at once) +
    first residual + norm2 + MLP + second residual + pruning head.

    q_ref   : (T, C)    bf16  pre-scaled query per window (centre point's q, or 0)
    kw/vw   : (T, A, C) bf16  normalized k/v of the window attendees
    bias_ref: (T, A)    f32   0.0 for a valid attendee slot, -1e30 otherwise
    r_ref   : (T, C)    f32   residual term (feats[shortcut] where shortcut >= 0)
    bd_ref  : (C, C)    bf16  block-diagonal ones: bd[c, c'] = 1 iff same head
    """
    T, A, C = kw_ref.shape

    # ---- multi-head expanding attention, all heads at once ----
    # per-head scores, replicated across each head's lanes:
    #   se[t,a,c] = sum_{c' in head(c)} q[t,c'] * k[t,a,c']
    q = q_ref[...]                                              # bf16, already scaled
    prod = kw_ref[...] * q[:, None, :]                          # bf16 VPU product
    se = jnp.dot(prod.reshape(T * A, C), bd_ref[...],
                 preferred_element_type=jnp.float32)            # bf16 MXU, f32 accum
    s = se.reshape(T, A, C) + bias_ref[...][:, :, None]         # additive -1e30 mask

    # one softmax over the attendee axis covers all heads (values are identical
    # within a head's lane group).
    smax = jnp.max(s, axis=1, keepdims=True)                    # (T, 1, C)
    e = jnp.exp(s - smax)
    denom = jnp.sum(e, axis=1, keepdims=True)
    w = e * pl.reciprocal(denom, approx=True)
    # TODO(synk): if a bundle dump shows EUP-bound, compute the softmax on a
    # head-compressed (T*A, H) slab and broadcast weights back with a one-hot
    # bf16 matmul (cuts exp count by head_dim-x).
    attn = jnp.sum((vw_ref[...] * w.astype(jnp.bfloat16)).astype(jnp.float32),
                   axis=1)                                      # bf16 mul, f32 accum

    x = attn + r_ref[...]                                       # residual 1 (f32)

    # ---- norm2 + MLP (bf16 matmuls, f32 accum) + residual ----
    mu = jnp.mean(x, axis=-1, keepdims=True)
    xc = x - mu
    var = jnp.mean(xc * xc, axis=-1, keepdims=True)
    xn = xc * jax.lax.rsqrt(var + LN_EPS) * g2_ref[...] + be2_ref[...]

    h = jnp.dot(xn.astype(jnp.bfloat16), w1_ref[...],
                preferred_element_type=jnp.float32) + b1_ref[...]
    h = 0.5 * h * (1.0 + _erf_approx(h * 0.7071067811865476))   # exact-erf GELU
    y = jnp.dot(h.astype(jnp.bfloat16), w2_ref[...],
                preferred_element_type=jnp.float32) + b2_ref[...]

    out = y + x
    o_ref[...] = out
    # pruning head, padded to 128 lanes for an unmasked, lane-dense store
    p_ref[...] = jnp.dot(out.astype(jnp.bfloat16), wp_ref[...],
                         preferred_element_type=jnp.float32) + bp_ref[...]


# ----------------------------------------------------------------------------
# pallas_call wrappers
# ----------------------------------------------------------------------------
def qkv_ln_projection(x, w_qkv, b_qkv, gamma1, beta1, tile):
    R, C = x.shape
    grid = (R // tile,)
    row = pl.BlockSpec((tile, C), lambda i: (i, 0))
    return pl.pallas_call(
        _qkv_ln_kernel,
        out_shape=(jax.ShapeDtypeStruct((R, C), jnp.bfloat16),   # q (pre-scaled)
                   jax.ShapeDtypeStruct((R, C), jnp.bfloat16),   # norm1(k)
                   jax.ShapeDtypeStruct((R, C), jnp.bfloat16)),  # norm1(v)
        grid=grid,
        in_specs=[row,
                  pl.BlockSpec((C, 3 * C), lambda i: (0, 0)),
                  pl.BlockSpec((1, 3 * C), lambda i: (0, 0)),
                  pl.BlockSpec((1, C), lambda i: (0, 0)),
                  pl.BlockSpec((1, C), lambda i: (0, 0))],
        out_specs=(row, row, row),
        compiler_params=pltpu.CompilerParams(dimension_semantics=("parallel",)),
    )(x, w_qkv, b_qkv, gamma1, beta1)


def attention_mlp_prune(q_sel, k_win, v_win, bias, resid, head_bd,
                        gamma2, beta2, w1_t, b1, w2_t, b2, wp_t, bp, tile):
    R, A, C = k_win.shape
    C4 = w1_t.shape[1]
    P = wp_t.shape[1]
    grid = (R // tile,)
    row2 = pl.BlockSpec((tile, C), lambda i: (i, 0))
    row3 = pl.BlockSpec((tile, A, C), lambda i: (i, 0, 0))
    rowm = pl.BlockSpec((tile, A), lambda i: (i, 0))
    rowp = pl.BlockSpec((tile, P), lambda i: (i, 0))
    return pl.pallas_call(
        _attn_mlp_prune_kernel,
        out_shape=(jax.ShapeDtypeStruct((R, C), jnp.float32),
                   jax.ShapeDtypeStruct((R, P), jnp.float32)),
        grid=grid,
        in_specs=[row2, row3, row3, rowm, row2,
                  pl.BlockSpec((C, C), lambda i: (0, 0)),
                  pl.BlockSpec((1, C), lambda i: (0, 0)),
                  pl.BlockSpec((1, C), lambda i: (0, 0)),
                  pl.BlockSpec((C, C4), lambda i: (0, 0)),
                  pl.BlockSpec((1, C4), lambda i: (0, 0)),
                  pl.BlockSpec((C4, C), lambda i: (0, 0)),
                  pl.BlockSpec((1, C), lambda i: (0, 0)),
                  pl.BlockSpec((C, P), lambda i: (0, 0)),
                  pl.BlockSpec((1, P), lambda i: (0, 0))],
        out_specs=(row2, rowp),
        compiler_params=pltpu.CompilerParams(
            dimension_semantics=("parallel",),
            vmem_limit_bytes=40 * 1024 * 1024),
    )(q_sel, k_win, v_win, bias, resid, head_bd,
      gamma2, beta2, w1_t, b1, w2_t, b2, wp_t, bp)


# ----------------------------------------------------------------------------
# Host-side glue (index bookkeeping with dynamic shapes, as in the reference)
# ----------------------------------------------------------------------------
def compute_hull_np(coords, shape, expand=True):
    """Numpy equivalent of compute_hull (scale=1): the 27 identity 3x3x3 convs
    reduce to shifted lookups of a dense index volume."""
    n = coords.shape[0]
    d1, d2, d3 = shape
    dense = np.zeros((d1, d2, d3), dtype=np.int64)
    dense[coords[:, 0], coords[:, 1], coords[:, 2]] = np.arange(1, n + 1)
    padded = np.zeros((d1 + 2, d2 + 2, d3 + 2), dtype=np.int64)
    padded[1:-1, 1:-1, 1:-1] = dense
    feats27 = np.stack([padded[di:di + d1, dj:dj + d2, dk:dk + d3]
                        for di in range(3) for dj in range(3) for dk in range(3)],
                       axis=0)                                  # (27, D1, D2, D3)
    if expand:
        keep = (feats27 > 0).any(axis=0)
    else:
        keep = feats27[13] > 0
    kx, ky, kz = np.nonzero(keep)                               # row-major == torch.nonzero
    hit_feats = feats27[:, kx, ky, kz].T - 1                    # (M, 27), -1 == empty slot
    new_inds = np.stack([np.zeros_like(kx), kx, ky, kz], axis=1).astype(np.int32)
    return hit_feats, new_inds


def _round_up(x, m):
    return -(-x // m) * m


def _pick_tile(rows, pref, mult=16):
    """Row tile: multiple of `mult`, capped at `pref`, aiming for >= 2 grid
    steps so both v7x TensorCores get work on small workloads."""
    half = _round_up(max(1, -(-rows // 2)), mult)
    return max(mult, min(pref, half))


def pad_rows(x, mult):
    r = x.shape[0]
    rp = _round_up(r, mult)
    if rp == r:
        return x
    pad_width = [(0, rp - r)] + [(0, 0)] * (x.ndim - 1)
    return jnp.pad(x, pad_width)


def grouped_conv1x1_matrix(w_conv, num_heads):
    """Fold Conv1d(C, C, 1, groups=H) weight (C, C//H, 1) into a (C, C) matrix so
    that k = x @ mat + bias."""
    w = np.asarray(w_conv, np.float32)
    c, hd = w.shape
    mat = np.zeros((c, c), np.float32)
    for o in range(c):
        g = o // hd
        mat[g * hd:(g + 1) * hd, o] = w[o]
    return jnp.asarray(mat)


def init_params(key, dim, num_heads, prune_out=20):
    hd = dim // num_heads
    ks = jax.random.split(key, 11)
    s = 0.1
    wq = s * jax.random.normal(ks[0], (dim, dim), jnp.float32)        # Linear(dim,dim,bias=False)
    wk_conv = s * jax.random.normal(ks[1], (dim, hd), jnp.float32)    # Conv1d weight (C, C//H, 1)
    bk = s * jax.random.normal(ks[2], (dim,), jnp.float32)
    wv_conv = s * jax.random.normal(ks[3], (dim, hd), jnp.float32)
    bv = s * jax.random.normal(ks[4], (dim,), jnp.float32)
    w1 = s * jax.random.normal(ks[5], (4 * dim, dim), jnp.float32)    # MLP lin1
    b1 = s * jax.random.normal(ks[6], (4 * dim,), jnp.float32)
    w2 = s * jax.random.normal(ks[7], (dim, 4 * dim), jnp.float32)    # MLP lin2
    b2 = s * jax.random.normal(ks[8], (dim,), jnp.float32)
    wp = s * jax.random.normal(ks[9], (prune_out, dim), jnp.float32)  # Pruning Linear(dim, 20)
    bp = s * jax.random.normal(ks[10], (prune_out,), jnp.float32)

    # fused (C, 3C) projection weight: [Wq^T | k_blockdiag | v_blockdiag], bf16 on the MXU
    k_mat = grouped_conv1x1_matrix(wk_conv, num_heads)
    v_mat = grouped_conv1x1_matrix(wv_conv, num_heads)
    w_qkv = jnp.concatenate([jnp.asarray(wq).T, k_mat, v_mat], axis=1).astype(jnp.bfloat16)
    b_qkv = jnp.concatenate([jnp.zeros((dim,), jnp.float32),
                             jnp.asarray(bk), jnp.asarray(bv)]).reshape(1, -1)

    # block-diagonal "head sum" matrix: bd[c, c'] = 1 iff same head (exact in bf16)
    head_of = np.arange(dim) // hd
    head_bd = jnp.asarray((head_of[:, None] == head_of[None, :]).astype(np.float32)
                          ).astype(jnp.bfloat16)

    # lane-dense pruning head: pad 20 -> 128 output columns with zeros
    wp_pad = np.zeros((dim, P_PAD), np.float32)
    wp_pad[:, :prune_out] = np.asarray(wp).T
    bp_pad = np.zeros((1, P_PAD), np.float32)
    bp_pad[0, :prune_out] = np.asarray(bp)

    return dict(
        num_heads=num_heads, prune_out=prune_out,
        w_qkv=w_qkv, b_qkv=b_qkv, head_bd=head_bd,
        gamma1=jnp.ones((1, dim), jnp.float32), beta1=jnp.zeros((1, dim), jnp.float32),
        gamma2=jnp.ones((1, dim), jnp.float32), beta2=jnp.zeros((1, dim), jnp.float32),
        w1_t=jnp.asarray(w1).T.astype(jnp.bfloat16), b1=jnp.asarray(b1).reshape(1, -1),
        w2_t=jnp.asarray(w2).T.astype(jnp.bfloat16), b2=jnp.asarray(b2).reshape(1, -1),
        wp_pad_t=jnp.asarray(wp_pad).astype(jnp.bfloat16), bp_pad=jnp.asarray(bp_pad),
    )


# ----------------------------------------------------------------------------
# Full forward pass of ExpandingTransformer
# ----------------------------------------------------------------------------
def expanding_transformer_forward(params, feats, coords, batch, spatial_shape):
    feats = jnp.asarray(feats, jnp.float32)
    n, c = feats.shape

    # ExpandingTransformer: coords = cat(batch, coords); attention uses coords[:, 1:]
    coords4 = np.concatenate([np.asarray(batch).reshape(-1, 1),
                              np.asarray(coords)], axis=1).astype(np.int64)
    attn_coords = coords4[:, 1:]

    # ---- compute_hull + per-count grouping (host-side, dynamic shapes) ----
    hit_feats, new_inds = compute_hull_np(attn_coords, spatial_shape, expand=True)
    m = hit_feats.shape[0]
    vals = (hit_feats >= 0).sum(axis=1)
    assert vals.min() >= 1, "expand=True guarantees every window has >=1 attendee"
    sort_inds = np.argsort(vals, kind="stable")
    hit_feats = hit_feats[sort_inds]
    new_inds = new_inds[sort_inds]
    vals = vals[sort_inds]
    uniq_counts = np.unique(vals)
    group_id = np.searchsorted(uniq_counts, vals)     # attendee-count group per window
    shortcut = hit_feats[:, 13]                       # centre-point index per window (-1 if empty)

    # ---- host-side padding of index/mask arrays (rows -> multiple of the
    # attention row tile) so the big expanded window tensors never hit jnp.pad ----
    tile_attn = _pick_tile(m, TILE_ATTN)
    m_pad = _round_up(m, tile_attn)
    hf_pad = np.full((m_pad, A_PAD), -1, dtype=np.int64)
    hf_pad[:m, :27] = hit_feats
    hit_idx = np.maximum(hf_pad, 0).astype(np.int32)
    # additive attendee mask: 0.0 for valid slots, -1e30 for padded slots
    bias_np = ((hf_pad >= 0).astype(np.float32) - 1.0) * NEG_BIG

    # The reference prepends a zero row to q on *every* group iteration, shifting
    # indices by the group id g; reproduce it with shifted indices + zero mask.
    q_zero = np.ones((m_pad,), dtype=bool)
    q_idx = np.zeros((m_pad,), dtype=np.int32)
    q_zero[:m] = shortcut < group_id
    q_idx[:m] = np.where(shortcut < group_id, 0, shortcut - group_id)
    # Residual: out[mask] += feats[shortcut[mask]], mask == (shortcut >= 0)
    r_valid = np.zeros((m_pad,), dtype=bool)
    r_idx = np.zeros((m_pad,), dtype=np.int32)
    r_valid[:m] = shortcut >= 0
    r_idx[:m] = np.maximum(shortcut, 0)

    # ---- fused q/k/v projection + norm1 (Pallas kernel 1, bf16 outputs) ----
    tile_proj = _pick_tile(n, TILE_PROJ)
    x_pad = pad_rows(feats, tile_proj)
    q_full, kln_full, vln_full = qkv_ln_projection(
        x_pad, params["w_qkv"], params["b_qkv"], params["gamma1"], params["beta1"],
        tile_proj)
    q, k_ln, v_ln = q_full[:n], kln_full[:n], vln_full[:n]

    # ---- window gathers (XLA glue; bf16 halves the HBM traffic; indices are
    # already tile-padded so the Pallas inputs need no extra pad copy) ----
    # TODO(synk): pull the gather into the attention kernel (scalar-prefetched
    # indices + VMEM-resident k_ln/v_ln or manual DMA gather) to avoid
    # materializing the 32x-expanded windows in HBM at all.
    hit_idx_j = jnp.asarray(hit_idx)
    k_win = jnp.take(k_ln, hit_idx_j, axis=0)          # (m_pad, 32, C) bf16
    v_win = jnp.take(v_ln, hit_idx_j, axis=0)
    q_sel = jnp.take(q, jnp.asarray(q_idx), axis=0)    # (m_pad, C) bf16, pre-scaled
    q_sel = jnp.where(jnp.asarray(q_zero)[:, None], jnp.zeros_like(q_sel), q_sel)
    resid = jnp.take(feats, jnp.asarray(r_idx), axis=0)
    resid = jnp.where(jnp.asarray(r_valid)[:, None], resid, jnp.zeros_like(resid))

    # ---- attention + residual + norm2/MLP + pruning head (Pallas kernel 2) ----
    out_full, pred_full = attention_mlp_prune(
        q_sel, k_win, v_win, jnp.asarray(bias_np), resid,
        params["head_bd"], params["gamma2"], params["beta2"],
        params["w1_t"], params["b1"], params["w2_t"], params["b2"],
        params["wp_pad_t"], params["bp_pad"], tile_attn)
    out = out_full[:m]
    prediction = pred_full[:m, :params["prune_out"]]

    # ---- Pruning: mask, dense prediction scatter, row selection (glue) ----
    # spconv.SparseConvTensor(prediction, coords, (256,256,32), 1).dense()
    # TODO(synk): spconv is replaced by an equivalent dense scatter.
    mask = np.asarray(jnp.argmax(prediction, axis=1) != 0)
    ni = jnp.asarray(new_inds, jnp.int32)
    dense = jnp.zeros((1, 256, 256, 32, prediction.shape[1]), jnp.float32)
    dense = dense.at[ni[:, 0], ni[:, 1], ni[:, 2], ni[:, 3], :].set(prediction)
    prediction_dense = jnp.moveaxis(dense, -1, 1)     # (1, 20, 256, 256, 32)

    keep = np.nonzero(mask)[0]
    feats_out = jnp.take(out, jnp.asarray(keep, jnp.int32), axis=0)
    coords_out = jnp.asarray(new_inds[mask])
    # out_projection is None by default (use_out_proj=False)
    return feats_out, coords_out, prediction_dense


# ----------------------------------------------------------------------------
# Demo
# ----------------------------------------------------------------------------
if __name__ == "__main__":
    SHAPE = (16, 16, 8)      # small spatial_shape for the demo
    N = 24                   # number of sparse points
    DIM = 32                 # feature dim
    HEADS = 4                # num_heads (head dim = 8)

    key = jax.random.PRNGKey(0)
    k_param, k_coord, k_feat = jax.random.split(key, 3)

    params = init_params(k_param, DIM, HEADS)

    total_voxels = SHAPE[0] * SHAPE[1] * SHAPE[2]
    flat = jax.random.choice(k_coord, total_voxels, shape=(N,), replace=False)
    coords = np.stack(np.unravel_index(np.asarray(flat), SHAPE), axis=1).astype(np.int32)
    batch = np.zeros((N,), np.int32)
    feats = jax.random.normal(k_feat, (N, DIM), jnp.float32)

    feats_out, coords_out, prediction_dense = expanding_transformer_forward(
        params, feats, coords, batch, SHAPE)

    jax.block_until_ready((feats_out, coords_out, prediction_dense))
    print("KERNEL_OK")
</pallas_src>

<mosaic_0001>
module attributes {stable_mosaic.version = 11 : i64} {
  func.func @_qkv_ln_kernel(%arg0: i32, %arg1: memref<16x32xf32, #tpu.memory_space<vmem>>, %arg2: memref<32x96xbf16, #tpu.memory_space<vmem>>, %arg3: memref<1x96xf32, #tpu.memory_space<vmem>>, %arg4: memref<1x32xf32, #tpu.memory_space<vmem>>, %arg5: memref<1x32xf32, #tpu.memory_space<vmem>>, %arg6: memref<16x32xbf16, #tpu.memory_space<vmem>>, %arg7: memref<16x32xbf16, #tpu.memory_space<vmem>>, %arg8: memref<16x32xbf16, #tpu.memory_space<vmem>>) attributes {dimension_semantics = [#tpu.dimension_semantics<parallel>], iteration_bounds = array<i64: 2>, scalar_prefetch = 0 : i64, scratch_operands = 0 : i64, tpu.core_type = #tpu.core_type<tc>, window_params = [{transform_indices = @transform_0, window_bounds = array<i64: 16, 32>}, {pipeline_mode = #tpu.pipeline_mode<synchronous>, transform_indices = @transform_1, window_bounds = array<i64: 32, 96>}, {pipeline_mode = #tpu.pipeline_mode<synchronous>, transform_indices = @transform_2, window_bounds = array<i64: 1, 96>}, {pipeline_mode = #tpu.pipeline_mode<synchronous>, transform_indices = @transform_3, window_bounds = array<i64: 1, 32>}, {pipeline_mode = #tpu.pipeline_mode<synchronous>, transform_indices = @transform_4, window_bounds = array<i64: 1, 32>}, {transform_indices = @transform_5, window_bounds = array<i64: 16, 32>}, {transform_indices = @transform_6, window_bounds = array<i64: 16, 32>}, {transform_indices = @transform_7, window_bounds = array<i64: 16, 32>}]} {
    %c0 = arith.constant 0 : index
    %c0_0 = arith.constant 0 : index
    %0 = vector.load %arg1[%c0, %c0_0] : memref<16x32xf32, #tpu.memory_space<vmem>>, vector<16x32xf32>
    %1 = arith.truncf %0 : vector<16x32xf32> to vector<16x32xbf16>
    %c0_1 = arith.constant 0 : index
    %c0_2 = arith.constant 0 : index
    %2 = vector.load %arg2[%c0_1, %c0_2] : memref<32x96xbf16, #tpu.memory_space<vmem>>, vector<32x96xbf16>
    %cst = arith.constant dense<0.000000e+00> : vector<16x96xf32>
    %3 = tpu.matmul %1, %2, %cst {dimension_numbers = #tpu.dot_dimension_numbers<[1], [0], [0], [1], [0, 0, 1, 1], [], []>} : vector<16x32xbf16>, vector<32x96xbf16>, vector<16x96xf32> -> vector<16x96xf32>
    %c0_3 = arith.constant 0 : index
    %c0_4 = arith.constant 0 : index
    %4 = vector.load %arg3[%c0_3, %c0_4] : memref<1x96xf32, #tpu.memory_space<vmem>>, vector<1x96xf32>
    %5 = vector.broadcast %4 : vector<1x96xf32> to vector<16x96xf32>
    %6 = arith.addf %3, %5 : vector<16x96xf32>
    %7 = vector.extract_strided_slice %6 {offsets = [0, 0], sizes = [16, 32], strides = [1, 1]} : vector<16x96xf32> to vector<16x32xf32>
    %8 = vector.extract_strided_slice %6 {offsets = [0, 32], sizes = [16, 32], strides = [1, 1]} : vector<16x96xf32> to vector<16x32xf32>
    %9 = vector.extract_strided_slice %6 {offsets = [0, 64], sizes = [16, 32], strides = [1, 1]} : vector<16x96xf32> to vector<16x32xf32>
    %c0_5 = arith.constant 0 : index
    %c0_6 = arith.constant 0 : index
    %10 = vector.load %arg4[%c0_5, %c0_6] : memref<1x32xf32, #tpu.memory_space<vmem>>, vector<1x32xf32>
    %c0_7 = arith.constant 0 : index
    %c0_8 = arith.constant 0 : index
    %11 = vector.load %arg5[%c0_7, %c0_8] : memref<1x32xf32, #tpu.memory_space<vmem>>, vector<1x32xf32>
    %cst_9 = arith.constant 0.176776692 : f32
    %12 = vector.broadcast %cst_9 : f32 to vector<16x32xf32>
    %13 = arith.mulf %7, %12 : vector<16x32xf32>
    %14 = arith.truncf %13 : vector<16x32xf32> to vector<16x32xbf16>
    %c0_10 = arith.constant 0 : index
    %c0_11 = arith.constant 0 : index
    %15 = vector.load %arg6[%c0_10, %c0_11] : memref<16x32xbf16, #tpu.memory_space<vmem>>, vector<16x32xbf16>
    tpu.vector_store %arg6[%c0_10, %c0_11], %14 {strides = array<i32>} : memref<16x32xbf16, #tpu.memory_space<vmem>>, vector<16x32xbf16>,
    %cst_12 = arith.constant dense<0.000000e+00> : vector<16xf32>
    %16 = vector.multi_reduction <add>, %8, %cst_12 [1] : vector<16x32xf32> to vector<16xf32>
    %17 = vector.shape_cast %16 : vector<16xf32> to vector<16x1xf32>
    %cst_13 = arith.constant 3.200000e+01 : f32
    %18 = vector.broadcast %cst_13 : f32 to vector<16x1xf32>
    %19 = arith.divf %17, %18 : vector<16x1xf32>
    %20 = vector.broadcast %19 : vector<16x1xf32> to vector<16x32xf32>
    %21 = arith.subf %8, %20 : vector<16x32xf32>
    %22 = arith.mulf %21, %21 : vector<16x32xf32>
    %cst_14 = arith.constant dense<0.000000e+00> : vector<16xf32>
    %23 = vector.multi_reduction <add>, %22, %cst_14 [1] : vector<16x32xf32> to vector<16xf32>
    %24 = vector.shape_cast %23 : vector<16xf32> to vector<16x1xf32>
    %cst_15 = arith.constant 3.200000e+01 : f32
    %25 = vector.broadcast %cst_15 : f32 to vector<16x1xf32>
    %26 = arith.divf %24, %25 : vector<16x1xf32>
    %cst_16 = arith.constant 9.99999974E-6 : f32
    %27 = vector.broadcast %cst_16 : f32 to vector<16x1xf32>
    %28 = arith.addf %26, %27 : vector<16x1xf32>
    %29 = math.rsqrt %28 : vector<16x1xf32>
    %30 = vector.broadcast %29 : vector<16x1xf32> to vector<16x32xf32>
    %31 = arith.mulf %21, %30 : vector<16x32xf32>
    %32 = vector.broadcast %10 : vector<1x32xf32> to vector<16x32xf32>
    %33 = arith.mulf %31, %32 : vector<16x32xf32>
    %34 = vector.broadcast %11 : vector<1x32xf32> to vector<16x32xf32>
    %35 = arith.addf %33, %34 : vector<16x32xf32>
    %36 = arith.truncf %35 : vector<16x32xf32> to vector<16x32xbf16>
    %c0_17 = arith.constant 0 : index
    %c0_18 = arith.constant 0 : index
    %37 = vector.load %arg7[%c0_17, %c0_18] : memref<16x32xbf16, #tpu.memory_space<vmem>>, vector<16x32xbf16>
    tpu.vector_store %arg7[%c0_17, %c0_18], %36 {strides = array<i32>} : memref<16x32xbf16, #tpu.memory_space<vmem>>, vector<16x32xbf16>,
    %cst_19 = arith.constant dense<0.000000e+00> : vector<16xf32>
    %38 = vector.multi_reduction <add>, %9, %cst_19 [1] : vector<16x32xf32> to vector<16xf32>
    %39 = vector.shape_cast %38 : vector<16xf32> to vector<16x1xf32>
    %cst_20 = arith.constant 3.200000e+01 : f32
    %40 = vector.broadcast %cst_20 : f32 to vector<16x1xf32>
    %41 = arith.divf %39, %40 : vector<16x1xf32>
    %42 = vector.broadcast %41 : vector<16x1xf32> to vector<16x32xf32>
    %43 = arith.subf %9, %42 : vector<16x32xf32>
    %44 = arith.mulf %43, %43 : vector<16x32xf32>
    %cst_21 = arith.constant dense<0.000000e+00> : vector<16xf32>
    %45 = vector.multi_reduction <add>, %44, %cst_21 [1] : vector<16x32xf32> to vector<16xf32>
    %46 = vector.shape_cast %45 : vector<16xf32> to vector<16x1xf32>
    %cst_22 = arith.constant 3.200000e+01 : f32
    %47 = vector.broadcast %cst_22 : f32 to vector<16x1xf32>
    %48 = arith.divf %46, %47 : vector<16x1xf32>
    %cst_23 = arith.constant 9.99999974E-6 : f32
    %49 = vector.broadcast %cst_23 : f32 to vector<16x1xf32>
    %50 = arith.addf %48, %49 : vector<16x1xf32>
    %51 = math.rsqrt %50 : vector<16x1xf32>
    %52 = vector.broadcast %51 : vector<16x1xf32> to vector<16x32xf32>
    %53 = arith.mulf %43, %52 : vector<16x32xf32>
    %54 = vector.broadcast %10 : vector<1x32xf32> to vector<16x32xf32>
    %55 = arith.mulf %53, %54 : vector<16x32xf32>
    %56 = vector.broadcast %11 : vector<1x32xf32> to vector<16x32xf32>
    %57 = arith.addf %55, %56 : vector<16x32xf32>
    %58 = arith.truncf %57 : vector<16x32xf32> to vector<16x32xbf16>
    %c0_24 = arith.constant 0 : index
    %c0_25 = arith.constant 0 : index
    %59 = vector.load %arg8[%c0_24, %c0_25] : memref<16x32xbf16, #tpu.memory_space<vmem>>, vector<16x32xbf16>
    tpu.vector_store %arg8[%c0_24, %c0_25], %58 {strides = array<i32>} : memref<16x32xbf16, #tpu.memory_space<vmem>>, vector<16x32xbf16>,
    return
  }
  func.func @transform_0(%arg0: i32) -> (i32, i32) {
    %c0_i32 = arith.constant 0 : i32
    %c0_i32_0 = arith.constant 0 : i32
    return %arg0, %c0_i32 : i32, i32
  }
  func.func @transform_1(%arg0: i32) -> (i32, i32) {
    %c0_i32 = arith.constant 0 : i32
    %c0_i32_0 = arith.constant 0 : i32
    %c0_i32_1 = arith.constant 0 : i32
    return %c0_i32, %c0_i32_0 : i32, i32
  }
  func.func @transform_2(%arg0: i32) -> (i32, i32) {
    %c0_i32 = arith.constant 0 : i32
    %c0_i32_0 = arith.constant 0 : i32
    %c0_i32_1 = arith.constant 0 : i32
    return %c0_i32, %c0_i32_0 : i32, i32
  }
  func.func @transform_3(%arg0: i32) -> (i32, i32) {
    %c0_i32 = arith.constant 0 : i32
    %c0_i32_0 = arith.constant 0 : i32
    %c0_i32_1 = arith.constant 0 : i32
    return %c0_i32, %c0_i32_0 : i32, i32
  }
  func.func @transform_4(%arg0: i32) -> (i32, i32) {
    %c0_i32 = arith.constant 0 : i32
    %c0_i32_0 = arith.constant 0 : i32
    %c0_i32_1 = arith.constant 0 : i32
    return %c0_i32, %c0_i32_0 : i32, i32
  }
  func.func @transform_5(%arg0: i32) -> (i32, i32) {
    %c0_i32 = arith.constant 0 : i32
    %c0_i32_0 = arith.constant 0 : i32
    return %arg0, %c0_i32 : i32, i32
  }
  func.func @transform_6(%arg0: i32) -> (i32, i32) {
    %c0_i32 = arith.constant 0 : i32
    %c0_i32_0 = arith.constant 0 : i32
    return %arg0, %c0_i32 : i32, i32
  }
  func.func @transform_7(%arg0: i32) -> (i32, i32) {
    %c0_i32 = arith.constant 0 : i32
    %c0_i32_0 = arith.constant 0 : i32
    return %arg0, %c0_i32 : i32, i32
  }
}

</mosaic_0001>

<bundles_post_ra>
// kernel: tpu_custom_call.1
= control target key start
LH: loop header
LB: loop body
LE: loop exit
PB: predicated region body
PF: predicated region fallthrough
CT: control target
= control target key end

     0   :  { %13 = vsyncpa [#allocation3], 0  ;;  %s1492_s0 = inlined_call_operand.hbm [shape: f32[32,32], index: 0, kind: input, shape index: {}]   ;;  %s1493_s1 = inlined_call_operand.hbm [shape: bf16[32,96], index: 1, kind: input, shape index: {}]   ;;  %s1494_s2 = inlined_call_operand.vmem [shape: f32[1,96], index: 2, kind: input, shape index: {}]   ;;  %s1495_s3 = inlined_call_operand.vmem [shape: f32[1,32], index: 3, kind: input, shape index: {}]   ;;  %s1496_s4 = inlined_call_operand.vmem [shape: f32[1,32], index: 4, kind: input, shape index: {}]   ;;  %s1497_s5 = inlined_call_operand.hbm [shape: bf16[32,32], index: 5, kind: output, shape index: {0}]   ;;  %s1498_s6 = inlined_call_operand.hbm [shape: bf16[32,32], index: 6, kind: output, shape index: {1}]   ;;  %s1499_s7 = inlined_call_operand.hbm [shape: bf16[32,32], index: 7, kind: output, shape index: {2}]  }
   0x1   :  { %15 = vsyncpa [#allocation3 + $0x1], 0 }
   0x2   :  { %16 = vsyncpa [#allocation6], 0 }
   0x3   :  { %17 = vsyncpa [#allocation4], 0 }
   0x4   :  { %19 = vsyncpa [#allocation4 + $0x1], 0 }
   0x5   :  { %20 = vsyncpa [#allocation9], 0 }
   0x6   :  { %22 = vsyncpa [#allocation9 + $0x1], 0  ;;  %s1151_s24 = smov 0   ;;  %s1153_s25 = smov 0  }
   0x7   :  { %s1155_s26 = smov 0   ;;  %s1157_s27 = smov 0  }
   0x8 LB: > { %s1172_s28 = sadd.s32 4294967295, %s1094_s27   ;;  %s1503_s29 = sadd.s32 4294967294, %s1094_s27   ;;  %s1094_s27 = sphi %s1157_s27, %s1526_s27   ;;  %s1090_s26 = sphi %s1155_s26, %s1525_s26   ;;  %s1086_s25 = sphi %s1153_s25, %s1524_s25   ;;  %s1082_s24 = sphi %s1151_s24, %s1523_s24  }
   0x9   : > { %p48_p0 = scmp.ne.s32.totalorder %s1086_s25, %s1082_s24  ;;  %p1500_p1 = scmp.eq.s32.totalorder %s1172_s28, 0 }
   0xa   : > { %p162_p3 = scmp.eq.s32.totalorder %s1503_s29, 1  ;;  %p763_p5 = scmp.ge.s32.totalorder %s1094_s27, 1 }
   0xb   : > { %p1183_p4 = por %p1500_p1, %p48_p0  ;;  %p221_p7 = scmp.lt.s32.totalorder %s1094_s27, 3 }
   0xc   : > { %p1188_p6 = por %p162_p3, %p48_p0  ;;  %s1096_s10 = smov [#allocation5]  }
   0xd   : > { %s1506_s30 = scalar_select %p1183_p4, 1, 0 }
   0xe   : > { %s1507_s8 = scalar_select %p1188_p6, 1, 0 }
   0xf   : > { %p1193_p8 = pnand %p763_p5, %p221_p7  ;;  %s233_s11 = sshll.u32 %s1096_s10, 4  ;;  %s1197_s11 = int_to_ptr.vmem [resolvable:$true] %s233_s11 }
  0x10   : > { %s1209_s13 = sadd.s32 1, %s1094_s27   ;;  %s35_s14 = sadd.s32 1, %s1090_s26 }
  0x11   : > { %s1508_s9 = scalar_select %p1193_p8, 1, 0 }
  0x12   : > { %p831_p9 = pneg %p1193_p8  ;;  %s32_s15 = ssub.s32 %s1094_s27, %s1209_s13 }
  0x13   : > { %s906_s18 = scalar_lea.hbm %s1493_s1, 256 }
  0x14   : > { %p1204_p11 = pnand %p831_p9, %p1500_p1  ;;  %p907_p12 = scmp.ne.s32.totalorder %s1493_s1, %s906_s18 }
  0x15   : > { %p913_p5 = scmp.lt.u32.totalorder %s906_s18, %s1493_s1 }
  0x16   : > { %p908_p13 = pneg %p1204_p11 }
  0x18   : > { %p909_p0 = pnand %p908_p13, %p907_p12 }
  0x1a   : > { %p910_p3 = pneg %p909_p0 }
  0x1c   : > { %p915_p7 = pnand %p913_p5, %p910_p3 }
  0x1e   : > { %918 = shalt.err (!%p915_p7)
}
  0x1f   : > { %s919_s23 = scalar_lea.vmem %s1197_s11, 256  ;;  %p927_p2 = scmp.lt.s32.totalorder %s1197_s11, %s1197_s11 }
  0x20   : > { %p920_p9 = scmp.ne.s32.totalorder %s1197_s11, %s919_s23  ;;  %p928_p6 = scmp.lt.s32.totalorder %s919_s23, %s919_s23 }
  0x22   : > { %p922_p10 = pnand %p920_p9, %p908_p13  ;;  %p929_p4 = por %p928_p6, %p927_p2 }
  0x24   : > { %p923_p1 = pneg %p922_p10 }
  0x26   : > { %p930_p8 = pnand %p929_p4, %p923_p1 }
  0x28   : > { %933 = shalt.err (!%p930_p8)
}
  0x29   : > { %s1097_s10 = smov 64   ;;  %s1098_s16 = smov 4  }
  0x2a   : > { %834 = dma.hbm_to_vmem [thread:$0]  (!%p1204_p11), %s1493_s1, 256, %s1197_s11, [#allocation6], %s1097_s10, %s1097_s10, %s1098_s16  }
  0x2b   : > { %p33_p2 = scmp.eq.s32.totalorder %s32_s15, 0  ;;  %p42_p1 = scmp.ne.s32.totalorder %s1090_s26, %s1086_s25 }
  0x2c   : > { %p43_p4 = scmp.eq.s32.totalorder %s1094_s27, 0  ;;  %p850_p6 = scmp.lt.s32.totalorder %s1094_s27, 2 }
  0x2d   : > { %s1240_s19 = scalar_select %p33_p2, %s1090_s26, %s35_s14  }
  0x2e   : > { %p44_p8 = por %p43_p4, %p42_p1  ;;  %p1510_p10 = scmp.eq.s32.totalorder %s1172_s28, 1 }
  0x2f   : > { %s256_s21 = sand.u32 1, %s1090_s26   ;;  %s798_s22 = sshll.u32 %s1094_s27, 8 }
  0x30   : > { %p1244_p12 = por %p1510_p10, %p42_p1  ;;  %s766_s23 = sshll.u32 %s256_s21, 4 }
  0x31   : > { %s1253_s17 = scalar_lea.hbm %s1492_s0, %s798_s22  ;;  %s260_s11 = scalar_lea.vmem [#allocation2], %s766_s23 }
  0x32   : > { %s267_s14 = sshll.u32 %s260_s11, 4  ;;  %p1255_p11 = pnand %p850_p6, %p44_p8  ;;  %s1259_s14 = int_to_ptr.vmem [resolvable:$true] %s267_s14 }
  0x33   : > { %s1261_s10 = scalar_lea.sflag [#allocation3], %s256_s21  ;;  %s934_s16 = scalar_lea.hbm %s1253_s17, 256 }
  0x34   : > { %p935_p13 = scmp.ne.s32.totalorder %s1253_s17, %s934_s16  ;;  %p936_p0 = pneg %p1255_p11 }
  0x35   : > { %s939_s22 = scalar_lea.hbm %s1492_s0, 512  ;;  %p940_p7 = scmp.lt.u32.totalorder %s1253_s17, %s1492_s0 }
  0x36   : > { %p937_p3 = pnand %p936_p0, %p935_p13  ;;  %p941_p9 = scmp.lt.u32.totalorder %s939_s22, %s934_s16 }
  0x37   : > { %p943_p1 = scmp.lt.u32.totalorder %s934_s16, %s1253_s17 }
  0x38   : > { %p938_p5 = pneg %p937_p3  ;;  %p942_p2 = por %p941_p9, %p940_p7 }
  0x3a   : > { %p944_p4 = por %p943_p1, %p942_p2 }
  0x3c   : > { %p945_p6 = pnand %p944_p4, %p938_p5 }
  0x3e   : > { %948 = shalt.err (!%p945_p6)
}
  0x3f   : > { %s949_s21 = scalar_lea.vmem %s1259_s14, 256  ;;  %s1099_s11 = smov [#allocation2]  }
  0x40   : > { %p950_p8 = scmp.ne.s32.totalorder %s1259_s14, %s949_s21  ;;  %s954_s29 = sshll.u32 %s1099_s11, 4  ;;  %s955_s29 = int_to_ptr.vmem [resolvable:$false] %s954_s29 }
  0x41   : > { %s956_s18 = scalar_lea.vmem %s955_s29, 512  ;;  %p957_p3 = scmp.lt.s32.totalorder %s1259_s14, %s955_s29 }
  0x42   : > { %p952_p10 = pnand %p950_p8, %p936_p0  ;;  %p958_p7 = scmp.lt.s32.totalorder %s956_s18, %s949_s21 }
  0x44   : > { %p953_p13 = pneg %p952_p10  ;;  %p959_p9 = por %p958_p7, %p957_p3 }
  0x46   : > { %p960_p2 = pnand %p959_p9, %p953_p13 }
  0x48   : > { %963 = shalt.err (!%p960_p2)
}
  0x49   : > { %s1100_s16 = smov 128   ;;  %s1101_s22 = smov 8  }
  0x4a   : > { %838 = dma.hbm_to_vmem [thread:$0]  (!%p1255_p11), %s1253_s17, 256, %s1259_s14, %s1261_s10, %s1100_s16, %s1100_s16, %s1101_s22  }
  0x4b   : > { %p1513_p0 = scmp.ne.s32.totalorder %s1508_s9, 0 }
  0x4c   : > { %s1292_s23 = sand.u32 (!%p1513_p0), 1, %s1086_s25   ;;  %p1514_p5 = scmp.ne.s32.totalorder (!%p1513_p0), %s1506_s30, 0 }
  0x4d   : > { %279 = sbr.rel (%p1513_p0) target bundleno = 1026 (0x402), region = 40  ;;  %s770_s12 = sshll.u32 (!%p1513_p0), %s1292_s23, 4 }
  0x4e   : > { %s282_s21 = scalar_lea.sflag (!%p1513_p0), [#allocation3], %s1292_s23  ;;  %s285_s11 = scalar_lea.vmem (!%p1513_p0), [#allocation2], %s770_s12 }
  0x54   : > { %1065 = dma.done.wait (%p1514_p5), %s282_s21, 256  }
  0x55   : > { %1067 = vsyncadd (%p1514_p5), %s282_s21, 4294967040  ;;  %p1515_p1 = scmp.eq.s32.totalorder %s1172_s28, 0 }
  0x57   : > { %1069 = dma.done.wait (%p1515_p1), [#allocation6], 256   ;;  %p1516_p11 = pmov %p1515_p1 }
  0x58   : > { %v1102_v0 = vmov 0.0   ;;  %vm1103_vm0 = vmmov 0   ;;  %v896_v1 = vld [vmem:[#allocation5] sm:$0xff]   ;;  %v897_v2 = vld [vmem:[#allocation5 + $0x8] sm:$0xff]   ;;  %vm361_vm1 = vcmask 261120   ;;  %s1309_s17 = sshll.u32 %s1292_s23, 3 }
  0x59   : > { %1071 = vsyncadd (%p1516_p11), [#allocation6], 4294967040  ;;  %811 = vmatprep.subr.bf16.mxu0 %v1102_v0  ;;  %815 = vmatprep.mubr.msk.bf16.mxu0 %vm1103_vm0, %v1102_v0  ;;  %v335_v3 = vld [vmem:[%s285_s11] sm:$0xff]  ;;  %v336_v4 = vld [vmem:[%s285_s11 + $0x8] sm:$0xff]  ;;  %s1104_s14 = smov 64   ;;  %s1504_s15 = smov 96  }
  0x5a   : > { %812 = vmatpush3.bf16.msra.mxu0 %v896_v1  ;;  %v337_v5 = vpack.c.bf16 %v336_v4, %v335_v3  ;;  %v775_v6 = vld [vmem:[%s1494_s2] ss:$0 sm:$0xff]  ;;  %vm418_vm2 = vcmask 257024   ;;  %s1316_s10 = scalar_lea.vmem [#allocation7], %s1309_s17  ;;  %s1106_s16 = smov 32  }
  0x5b   : > { %813 = vmatprep.subr.bf16.mxu0 %v1102_v0  ;;  %v781_v41 = vld [vmem:[%s1495_s3] ss:$0 sm:$0xff]  ;;  %s586_s21 = sshll.u32 %s1316_s10, 4  ;;  %s1348_s11 = sshll.u32 %s1172_s28, 7  ;;  %s1350_s21 = int_to_ptr.vmem [resolvable:$true] %s586_s21 }
  0x5c   : > { %v782_v50 = vld [vmem:[%s1496_s4] ss:$0 sm:$0xff]  ;;  %s964_s18 = scalar_lea.vmem %s1350_s21, 128 }
  0x5d   : > { %p965_p4 = scmp.ne.s32.totalorder %s1350_s21, %s964_s18 }
  0x5e   : > { %814 = vmatpush3.bf16.msra.mxu0 %v897_v2 }
  0x5f   : > { %p966_p6 = pnand %p965_p4, %p1244_p12 }
  0x61   : > { %816 = vmatmul.mubr.msk.bf16.vlgmr.msra.gmra.mrb[0].mxu0 %vm361_vm1, %v337_v5  ;;  %p967_p8 = pneg %p966_p6 }
 0x134   : > { %v399_v7 = vpop.f32.mrb[0].mxu0 }
 0x135   : > { %v400_v8 = vadd.f32 %v775_v6, %v399_v7  ;;  %v817_v9 = vpop.f32.mrb[1].mxu0 }
 0x136   : > { %v402_v10 = vpop.f32.mrb[2].mxu0 }
 0x137   : > { %v408_v11 = vmul.f32 0.17677669, %v400_v8  ;;  %v403_v12 = vadd.f32 %v775_v6, %v402_v10  ;;  %498 = vrot.lane.b32.xlu1 %v400_v8, %s1104_s14  ;;  %423 = vrot.lane.b32.xlu0 %v400_v8, %s1504_s15  ;;  %v818_v13 = vpop.f32.mrb[3].mxu0 }
 0x139   : > { %v799_v14 = vpack.c.bf16 %v408_v11, %v408_v11  ;;  %v409_v15 = vmul.f32 0.17677669, %v403_v12 }
 0x13b   : > { %v800_v16 = vpack.c.bf16 %v409_v15, %v409_v15  ;;  %500 = vrot.lane.b32.xlu1 %v403_v12, %s1104_s14  ;;  %425 = vrot.lane.b32.xlu0 %v403_v12, %s1504_s15  ;;  %419 = vst.msk [vmem:[%s1316_s10] sm:$0xf] %vm418_vm2, %v799_v14 }
 0x13d   : > { %420 = vst.msk [vmem:[%s1316_s10 + $0x4] sm:$0xf] %vm418_vm2, %v800_v16  ;;  %s1356_s10 = scalar_lea.hbm %s1497_s5, %s1348_s11 }
 0x1a9   : > { %v499_v17 = vpop.permute.xlu1 %498  ;;  %v424_v18 = vpop.permute.xlu0 %423 }
 0x1aa   : > { %v429_v19 = vsel %vm361_vm1, %v424_v18, 0.0  ;;  %v504_v21 = vsel %vm361_vm1, %v499_v17, 0.0 }
 0x1ab   : > { %430 = vadd.xlane.f32.xlu0 %v429_v19 }
 0x1ad   : > { %v426_v20 = vpop.permute.xlu0 %425  ;;  %v501_v23 = vpop.permute.xlu1 %500 }
 0x1ae   : > { %v432_v22 = vsel %vm361_vm1, %v426_v20, 0.0  ;;  %v507_v24 = vsel %vm361_vm1, %v501_v23, 0.0 }
 0x1af   : > { %505 = vadd.xlane.f32.xlu0 %v504_v21  ;;  %433 = vadd.xlane.f32.xlu1 %v432_v22 }
 0x1b3   : > { %508 = vadd.xlane.f32.xlu0 %v507_v24 }
 0x238   : > { %v431_v25 = vpop.xlane.xlu0 %430 }
 0x239   : > { %v436_v26 = vmul.f32 0.03125, %v431_v25 }
 0x23b   : > { %v438_v27 = vsub.f32 %v400_v8, %v436_v26 }
 0x23c   : > { %v434_v28 = vpop.xlane.xlu1 %433  ;;  %v506_v29 = vpop.xlane.xlu0 %505 }
 0x23d   : > { %v437_v30 = vmul.f32 0.03125, %v434_v28  ;;  %v510_v31 = vmul.f32 0.03125, %v506_v29  ;;  %v440_v32 = vmul.f32 %v438_v27, %v438_v27 }
 0x23f   : > { %v439_v33 = vsub.f32 %v403_v12, %v437_v30  ;;  %v512_v34 = vsub.f32 %v400_v8, %v510_v31  ;;  %444 = vrot.lane.b32.xlu1 %v440_v32, %s1504_s15 }
 0x240   : > { %v509_v35 = vpop.xlane.xlu0 %508 }
 0x241   : > { %v511_v36 = vmul.f32 0.03125, %v509_v35  ;;  %v441_v37 = vmul.f32 %v439_v33, %v439_v33  ;;  %v514_v38 = vmul.f32 %v512_v34, %v512_v34 }
 0x243   : > { %v1327_v39 = vsub.f32 %v403_v12, %v511_v36  ;;  %446 = vrot.lane.b32.xlu0 %v441_v37, %s1504_s15  ;;  %518 = vrot.lane.b32.xlu1 %v514_v38, %s1104_s14 }
 0x245   : > { %v515_v40 = vmul.f32 %v1327_v39, %v1327_v39 }
 0x247   : > { %520 = vrot.lane.b32.xlu1 %v515_v40, %s1104_s14 }
 0x24b   : > { %469 = vrot.lane.b32.xlu1 %v781_v41, %s1106_s16 }
 0x2b1   : > { %v445_v42 = vpop.permute.xlu1 %444 }
 0x2b2   : > { %v450_v43 = vsel %vm361_vm1, %v445_v42, 0.0 }
 0x2b3   : > { %451 = vadd.xlane.f32.xlu0 %v450_v43 }
 0x2b5   : > { %v519_v44 = vpop.permute.xlu1 %518  ;;  %v447_v45 = vpop.permute.xlu0 %446 }
 0x2b6   : > { %v524_v46 = vsel %vm361_vm1, %v519_v44, 0.0  ;;  %v453_v47 = vsel %vm361_vm1, %v447_v45, 0.0 }
 0x2b7   : > { %525 = vadd.xlane.f32.xlu0 %v524_v46  ;;  %454 = vadd.xlane.f32.xlu1 %v453_v47 }
 0x2b9   : > { %v521_v48 = vpop.permute.xlu1 %520 }
 0x2ba   : > { %v527_v49 = vsel %vm361_vm1, %v521_v48, 0.0 }
 0x2bb   : > { %528 = vadd.xlane.f32.xlu0 %v527_v49 }
 0x2bd   : > { %v470_v51 = vpop.permute.xlu1 %469 }
 0x2c8   : > { %479 = vrot.lane.b32.xlu1 %v782_v50, %s1106_s16  ;;  %s1107_s16 = smov [#allocation7]  }
 0x2c9   : > { %s968_s22 = sshll.u32 %s1107_s16, 4  ;;  %s969_s22 = int_to_ptr.vmem [resolvable:$false] %s968_s22 }
 0x2ca   : > { %s970_s12 = scalar_lea.vmem %s969_s22, 256  ;;  %p971_p10 = scmp.lt.s32.totalorder %s1350_s21, %s969_s22 }
 0x2cb   : > { %p972_p13 = scmp.lt.s32.totalorder %s970_s12, %s964_s18 }
 0x2cc   : > { %543 = vrot.lane.b32.xlu1 %v782_v50, %s1104_s14 }
 0x2cd   : > { %p973_p3 = por %p972_p13, %p971_p10 }
 0x2cf   : > { %p974_p7 = pnand %p973_p3, %p967_p8 }
 0x2d1   : > { %538 = vrot.lane.b32.xlu0 %v781_v41, %s1104_s14 }
 0x340   : > { %v452_v52 = vpop.xlane.xlu0 %451 }
 0x341   : > { %v456_v53 = vmul.f32 0.03125, %v452_v52 }
 0x343   : > { %v458_v54 = vadd.f32 1e-05, %v456_v53 }
 0x344   : > { %v455_v55 = vpop.xlane.xlu1 %454  ;;  %v526_v56 = vpop.xlane.xlu0 %525 }
 0x345   : > { %898 = vrsqrt.f32 %v458_v54  ;;  %v457_v57 = vmul.f32 0.03125, %v455_v55  ;;  %v530_v58 = vmul.f32 0.03125, %v526_v56 }
 0x347   : > { %v459_v59 = vadd.f32 1e-05, %v457_v57  ;;  %v532_v60 = vadd.f32 1e-05, %v530_v58 }
 0x348   : > { %v529_v61 = vpop.xlane.xlu0 %528  ;;  %v480_v1 = vpop.permute.xlu1 %479 }
 0x349   : > { %900 = vrsqrt.f32 %v459_v59  ;;  %v531_v62 = vmul.f32 0.03125, %v529_v61 }
 0x34a   : > { %902 = vrsqrt.f32 %v532_v60 }
 0x34b   : > { %v533_v63 = vadd.f32 1e-05, %v531_v62 }
 0x34c   : > { %v539_v8 = vpop.permute.xlu0 %538  ;;  %v544_v12 = vpop.permute.xlu1 %543 }
 0x34d   : > { %904 = vrsqrt.f32 %v533_v63 }
 0x34f   : > { %v899_v0 = vpop.eup %898 }
 0x350   : > { %v462_v2 = vmul.f32 %v899_v0, %v438_v27 }
 0x352   : > { %v472_v3 = vmul.f32 %v470_v51, %v462_v2 }
 0x353   : > { %v901_v4 = vpop.eup %900 }
 0x354   : > { %v903_v5 = vpop.eup %902  ;;  %v463_v6 = vmul.f32 %v901_v4, %v439_v33  ;;  %v482_v7 = vadd.f32 %v480_v1, %v472_v3 }
 0x355   : > { %v536_v9 = vmul.f32 %v903_v5, %v512_v34 }
 0x356   : > { %v473_v10 = vmul.f32 %v470_v51, %v463_v6  ;;  %v801_v11 = vpack.c.bf16 %v482_v7, %v482_v7 }
 0x357   : > { %977 = shalt.err (!%p974_p7)
}
 0x358   : > { %s978_s30 = scalar_lea.hbm %s1356_s10, 128  ;;  %s982_s16 = scalar_lea.hbm %s1497_s5, 256 }
 0x359   : > { %p979_p9 = scmp.ne.s32.totalorder %s1356_s10, %s978_s30  ;;  %p983_p5 = scmp.lt.u32.totalorder %s1356_s10, %s1497_s5 }
 0x35a   : > { %p984_p1 = scmp.lt.u32.totalorder %s982_s16, %s978_s30  ;;  %p986_p4 = scmp.lt.u32.totalorder %s978_s30, %s1356_s10 }
 0x35b   : > { %p980_p2 = pnand %p979_p9, %p1244_p12 }
 0x35c   : > { %p985_p11 = por %p984_p1, %p983_p5 }
 0x35d   : > { %p981_p0 = pneg %p980_p2 }
 0x35e   : > { %p987_p6 = por %p986_p4, %p985_p11 }
 0x360   : > { %p988_p8 = pnand %p987_p6, %p981_p0 }
 0x362   : > { %991 = shalt.err (!%p988_p8)
}
 0x363   : > { %s1108_s18 = smov 4   ;;  %s1517_s12 = scalar_lea.sflag [#allocation4], %s1292_s23  ;;  %v905_v13 = vpop.eup %904  ;;  %v541_v14 = vmul.f32 %v539_v8, %v536_v9  ;;  %v483_v15 = vadd.f32 %v480_v1, %v473_v10 }
 0x364   : > { %825 = dma.vmem_to_hbm [thread:$0]  (%p1244_p12), %s1350_s21, 128, %s1356_s10, %s1517_s12, %s1104_s14, %s1104_s14, %s1108_s18   ;;  %v537_v16 = vmul.f32 %v905_v13, %v1327_v39 }
 0x365   : > { %s1518_s15 = smov 96   ;;  %v546_v17 = vadd.f32 %v544_v12, %v541_v14  ;;  %v802_v18 = vpack.c.bf16 %v483_v15, %v483_v15  ;;  %s322_s23 = scalar_lea.vmem [#allocation8], %s1309_s17 }
 0x366   : > { %490 = vrot.lane.b32.xlu0 %v801_v11, %s1518_s15  ;;  %v542_v19 = vmul.f32 %v539_v8, %v537_v16  ;;  %s602_s21 = sshll.u32 %s322_s23, 4  ;;  %s567_s10 = sand.u32 1, %s1172_s28   ;;  %s1393_s21 = int_to_ptr.vmem [resolvable:$true] %s602_s21 }
 0x367   : > { %v803_v20 = vpack.c.bf16 %v546_v17, %v546_v17  ;;  %492 = vrot.lane.b32.xlu1 %v802_v18, %s1518_s15  ;;  %s1399_s9 = scalar_lea.hbm %s1498_s6, %s1348_s11  ;;  %s1402_s16 = scalar_lea.vmem [#allocation10], %s1309_s17 }
 0x368   : > { %v547_v21 = vadd.f32 %v544_v12, %v542_v19  ;;  %s1408_s28 = scalar_lea.sflag [#allocation9], %s567_s10  ;;  %s992_s12 = scalar_lea.vmem %s1393_s21, 128 }
 0x369   : > { %p993_p10 = scmp.ne.s32.totalorder %s1393_s21, %s992_s12  ;;  %s1109_s15 = smov [#allocation8]  }
 0x36a   : > { %554 = vrot.lane.b32.xlu0 %v803_v20, %s1104_s14  ;;  %v804_v22 = vpack.c.bf16 %v547_v21, %v547_v21  ;;  %s996_s29 = sshll.u32 %s1109_s15, 4  ;;  %s997_s29 = int_to_ptr.vmem [resolvable:$false] %s996_s29 }
 0x36b   : > { %p994_p13 = pnand %p993_p10, %p1244_p12  ;;  %s998_s17 = scalar_lea.vmem %s997_s29, 256 }
 0x36c   : > { %556 = vrot.lane.b32.xlu1 %v804_v22, %s1104_s14  ;;  %p999_p7 = scmp.lt.s32.totalorder %s1393_s21, %s997_s29  ;;  %p1000_p9 = scmp.lt.s32.totalorder %s998_s17, %s992_s12 }
 0x36d   : > { %p995_p3 = pneg %p994_p13 }
 0x36e   : > { %p1001_p2 = por %p1000_p9, %p999_p7 }
 0x370   : > { %p1002_p0 = pnand %p1001_p2, %p995_p3 }
 0x3d8   : > { %v491_v23 = vpop.permute.xlu0 %490 }
 0x3d9   : > { %496 = vst.msk [vmem:[%s322_s23] sm:$0xf] %vm418_vm2, %v491_v23  ;;  %v493_v24 = vpop.permute.xlu1 %492 }
 0x3da   : > { %497 = vst.msk [vmem:[%s322_s23 + $0x4] sm:$0xf] %vm418_vm2, %v493_v24 }
 0x3dc   : > { %v555_v25 = vpop.permute.xlu0 %554 }
 0x3dd   : > { %560 = vst.msk [vmem:[%s1402_s16] sm:$0xf] %vm418_vm2, %v555_v25 }
 0x3de   : > { %1005 = shalt.err (!%p1002_p0)
}
 0x3df   : > { %s1006_s23 = scalar_lea.hbm %s1399_s9, 128  ;;  %s1010_s15 = scalar_lea.hbm %s1498_s6, 256 }
 0x3e0   : > { %p1007_p5 = scmp.ne.s32.totalorder %s1399_s9, %s1006_s23  ;;  %p1011_p4 = scmp.lt.u32.totalorder %s1399_s9, %s1498_s6 }
 0x3e1   : > { %p1012_p6 = scmp.lt.u32.totalorder %s1010_s15, %s1006_s23  ;;  %p1014_p10 = scmp.lt.u32.totalorder %s1006_s23, %s1399_s9 }
 0x3e2   : > { %p1008_p1 = pnand %p1007_p5, %p1244_p12 }
 0x3e3   : > { %p1013_p8 = por %p1012_p6, %p1011_p4 }
 0x3e4   : > { %p1009_p11 = pneg %p1008_p1 }
 0x3e5   : > { %p1015_p13 = por %p1014_p10, %p1013_p8 }
 0x3e7   : > { %p1016_p3 = pnand %p1015_p13, %p1009_p11 }
 0x3e9   : > { %1019 = shalt.err (!%p1016_p3)
}
 0x3ea   : > { %826 = dma.vmem_to_hbm [thread:$0]  (%p1244_p12), %s1393_s21, 128, %s1399_s9, %s1408_s28, %s1104_s14, %s1104_s14, %s1108_s18   ;;  %v557_v26 = vpop.permute.xlu1 %556 }
 0x3eb   : > { %s1519_s22 = sshll.u32 %s1402_s16, 4  ;;  %s1443_s23 = scalar_lea.hbm %s1499_s7, %s1348_s11  ;;  %561 = vst.msk [vmem:[%s1402_s16 + $0x4] sm:$0xf] %vm418_vm2, %v557_v26  ;;  %s1437_s22 = int_to_ptr.vmem [resolvable:$true] %s1519_s22 }
 0x3ec   : > { %s1020_s10 = scalar_lea.vmem %s1437_s22, 128  ;;  %s1110_s21 = smov [#allocation10]  }
 0x3ed   : > { %p1021_p7 = scmp.ne.s32.totalorder %s1437_s22, %s1020_s10  ;;  %s1024_s9 = sshll.u32 %s1110_s21, 4  ;;  %s1025_s9 = int_to_ptr.vmem [resolvable:$false] %s1024_s9 }
 0x3ee   : > { %s1026_s30 = scalar_lea.vmem %s1025_s9, 256  ;;  %p1027_p0 = scmp.lt.s32.totalorder %s1437_s22, %s1025_s9 }
 0x3ef   : > { %p1022_p9 = pnand %p1021_p7, %p1244_p12  ;;  %p1028_p5 = scmp.lt.s32.totalorder %s1026_s30, %s1020_s10 }
 0x3f1   : > { %p1023_p2 = pneg %p1022_p9  ;;  %p1029_p1 = por %p1028_p5, %p1027_p0 }
 0x3f3   : > { %p1030_p11 = pnand %p1029_p1, %p1023_p2 }
 0x3f5   : > { %1033 = shalt.err (!%p1030_p11)
}
 0x3f6   : > { %s1034_s11 = scalar_lea.hbm %s1443_s23, 128  ;;  %s1038_s29 = scalar_lea.hbm %s1499_s7, 256 }
 0x3f7   : > { %p1035_p4 = scmp.ne.s32.totalorder %s1443_s23, %s1034_s11  ;;  %p1039_p10 = scmp.lt.u32.totalorder %s1443_s23, %s1499_s7 }
 0x3f8   : > { %p1040_p13 = scmp.lt.u32.totalorder %s1038_s29, %s1034_s11  ;;  %p1042_p7 = scmp.lt.u32.totalorder %s1034_s11, %s1443_s23 }
 0x3f9   : > { %p1036_p6 = pnand %p1035_p4, %p1244_p12 }
 0x3fa   : > { %p1041_p3 = por %p1040_p13, %p1039_p10 }
 0x3fb   : > { %p1037_p8 = pneg %p1036_p6 }
 0x3fc   : > { %p1043_p9 = por %p1042_p7, %p1041_p3 }
 0x3fe   : > { %p1044_p2 = pnand %p1043_p9, %p1037_p8 }
 0x400   : > { %1047 = shalt.err (!%p1044_p2)
}
 0x401   : > { %827 = dma.vmem_to_hbm [thread:$0]  (%p1244_p12), %s1437_s22, 128, %s1443_s23, %s1408_s28, %s1104_s14, %s1104_s14, %s1108_s18  }
 0x402 PF: > { %s633_s10 = sand.u32 1, %s1082_s24   ;;  %p1520_p0 = scmp.ne.s32.totalorder %s1507_s8, 0 }
 0x403   : > { %p1521_p5 = scmp.ge.s32.totalorder %s1094_s27, 2  ;;  %s634_s21 = scalar_lea.sflag [#allocation4], %s633_s10 }
 0x405   : > { %p840_p1 = pnand %p1521_p5, %p1520_p0 }
 0x407   : > { %1073 = dma.done.wait (!%p840_p1), %s634_s21, 128  }
 0x408   : > { %1075 = vsyncadd (!%p840_p1), %s634_s21, 4294967168  ;;  %s1522_s20 = sadd.s32 4294967294, %s1094_s27  }
 0x409   : > { %s642_s9 = sand.u32 1, %s1522_s20  }
 0x40a   : > { %s643_s30 = scalar_lea.sflag [#allocation9], %s642_s9 }
 0x40b   : > { %1077 = dma.done.wait (!%p840_p1), %s643_s30, 256  }
 0x40c   : > { %1079 = vsyncadd (!%p840_p1), %s643_s30, 4294967040  ;;  %p25_p12 = scmp.ge.s32.totalorder %s1209_s13, 4   ;;  %s1523_s24 = smov %s1086_s25 }
 0x40d   : > { %s1524_s25 = smov %s1090_s26  ;;  %s1525_s26 = smov %s1240_s19 }
 0x40e   : > { %s1526_s27 = smov %s1209_s13  ;;  %27 = sbr.rel (!%p25_p12) target bundleno = 8 (0x8), region = 121 }
 0x415   :  { %657 = vsyncpa [#allocation3], 1 }
 0x416   :  { %659 = vsyncpa [#allocation3 + $0x1], 1 }
 0x417   :  { %660 = vsyncpa [#allocation6], 1 }
 0x418   :  { %661 = vsyncpa [#allocation4], 1 }
 0x419   :  { %663 = vsyncpa [#allocation4 + $0x1], 1 }
 0x41a   :  { %664 = vsyncpa [#allocation9], 1 }
 0x41b   :  { %666 = vsyncpa [#allocation9 + $0x1], 1 }

</bundles_post_ra>
